<compile_context>
chip_gen: v6e
topology: v6e:2x2x1
jax: 0.10.0
libtpu: 0.0.40
codegen_flags: <defaults>
</compile_context>

<pallas_src>
import jax
import jax.numpy as jnp
from jax.experimental import pallas as pl
from jax.experimental.pallas import tpu as pltpu

IN_FEATURES = 300
OUT_FEATURES = 4


def _round_up(x, m):
    return ((x + m - 1) // m) * m


def linear_kernel(x_ref, w_ref, b_ref, o_ref):
    # One MXU pass per batch tile (K=300 is a single push), f32 accumulation
    # regardless of streaming dtype, f32 bias add on the VPU.
    o_ref[...] = (
        jnp.dot(x_ref[...], w_ref[...], preferred_element_type=jnp.float32)
        + b_ref[...]
    ).astype(o_ref.dtype)


def linear_forward(x, w_io, bias, *, tb_max=4096, min_pallas_batch=1024,
                   force_pallas=False):
    """Forward pass of Linear(300 -> 4).

    x:    [B, 300]  f32 or bf16 (streamed as-is; no wrapper cast pass)
    w_io: [300, 4]  weight kept pre-transposed (no per-call .T)
    bias: [4]       f32
    returns logits [B, 4] f32
    """
    B, in_f = x.shape
    out_f = w_io.shape[1]

    if w_io.dtype != x.dtype:
        w_io = w_io.astype(x.dtype)  # 1.2K elements -> free
    b2 = bias.reshape(1, out_f).astype(jnp.float32)

    # Tiny batches: let XLA fuse the GEMV with its producers/consumers instead
    # of paying pallas_call setup/pipeline overhead.
    if B < min_pallas_batch and not force_pallas:
        return (jnp.dot(x, w_io, preferred_element_type=jnp.float32)
                + b2).astype(jnp.float32)

    # Batch tile: multiple of 8 (sublane), capped at tb_max rows; for moderate
    # B also capped at ~B/2 so the grid has >= 2 tiles for v7x's 2 TensorCores.
    TB = min(tb_max, _round_up(B, 8))
    if B >= 16:
        TB = min(TB, _round_up(pl.cdiv(B, 2), 8))
    TB = max(TB, 8)
    grid = (pl.cdiv(B, TB),)  # ragged last tile handled by Pallas masking

    itemsize = jnp.dtype(x.dtype).itemsize
    w_itemsize = jnp.dtype(w_io.dtype).itemsize

    cost = pl.CostEstimate(
        flops=2 * B * in_f * out_f,
        transcendentals=0,
        bytes_accessed=(B * in_f * itemsize          # x read
                        + B * out_f * 4              # logits write (f32)
                        + in_f * out_f * w_itemsize  # W read
                        + out_f * 4),                # bias read
    )

    # VMEM budget: double-buffered padded tiles + 25% slack (lane dim pads to
    # 128, sublane dim to 8).
    def _pad_bytes(rows, cols, isz):
        return _round_up(rows, 8) * _round_up(cols, 128) * isz

    vmem_needed = 2 * (
        _pad_bytes(TB, in_f, itemsize)
        + _pad_bytes(TB, out_f, 4)
        + _pad_bytes(in_f, out_f, w_itemsize)
        + _pad_bytes(1, out_f, 4)
    )
    vmem_limit = int(min(64 << 20, max(16 << 20, int(vmem_needed * 1.25))))

    return pl.pallas_call(
        linear_kernel,
        out_shape=jax.ShapeDtypeStruct((B, out_f), jnp.float32),
        grid=grid,
        in_specs=[
            pl.BlockSpec((TB, in_f), lambda i: (i, 0)),      # x: tiled over batch
            pl.BlockSpec((in_f, out_f), lambda i: (0, 0)),   # W: resident
            pl.BlockSpec((1, out_f), lambda i: (0, 0)),      # bias: resident
        ],
        out_specs=pl.BlockSpec((TB, out_f), lambda i: (i, 0)),
        compiler_params=pltpu.CompilerParams(
            # Batch tiles are independent -> shard across v7x's 2 TensorCores.
            dimension_semantics=("parallel",),
            vmem_limit_bytes=vmem_limit,
        ),
        cost_estimate=cost,
    )(x, w_io, b2)


def init_params(key, *, weight_dtype=jnp.float32):
    """Init matching the PyTorch module, but weight stored as [in_f, out_f].

    xavier_normal_ std = sqrt(2 / (fan_in + fan_out)) (orientation-invariant),
    bias ~ U(-1/sqrt(fan_in), 1/sqrt(fan_in)) (PyTorch Linear default).
    """
    k_w, k_b = jax.random.split(key)
    fan_in, fan_out = IN_FEATURES, OUT_FEATURES
    xavier_std = (2.0 / (fan_in + fan_out)) ** 0.5
    w_io = xavier_std * jax.random.normal(k_w, (fan_in, fan_out), dtype=jnp.float32)
    bound = 1.0 / (fan_in ** 0.5)
    bias = jax.random.uniform(
        k_b, (fan_out,), dtype=jnp.float32, minval=-bound, maxval=bound
    )
    return w_io.astype(weight_dtype), bias


if __name__ == "__main__":
    key = jax.random.PRNGKey(0)
    k_x, k_p, k_x2, k_x3 = jax.random.split(key, 4)

    w_io, bias = init_params(k_p)

    # 1) Small deterministic example, forced through the Pallas path: [16,300]
    #    -> TB=8 -> 2-tile grid (exercises megacore-style tiling).
    B = 16
    x = jax.random.normal(k_x, (B, IN_FEATURES), dtype=jnp.float32)
    logits = jax.block_until_ready(linear_forward(x, w_io, bias, force_pallas=True))
    ref = x @ w_io + bias
    assert logits.shape == (B, OUT_FEATURES)
    assert jnp.allclose(logits, ref, atol=1e-5, rtol=1e-5)

    # 2) Ragged last batch tile (B=13, TB=8, grid=2, no wrapper jnp.pad).
    B2 = 13
    x2 = jax.random.normal(k_x2, (B2, IN_FEATURES), dtype=jnp.float32)
    logits2 = jax.block_until_ready(
        linear_forward(x2, w_io, bias, tb_max=8, force_pallas=True))
    ref2 = x2 @ w_io + bias
    assert logits2.shape == (B2, OUT_FEATURES)
    assert jnp.allclose(logits2, ref2, atol=1e-5, rtol=1e-5)

    # 3) bf16-at-rest activations streamed directly (no wrapper cast pass),
    #    f32 accumulation; looser tolerance for bf16 numerics.
    B3 = 24
    x3 = jax.random.normal(k_x3, (B3, IN_FEATURES), dtype=jnp.float32)
    logits3 = jax.block_until_ready(
        linear_forward(x3.astype(jnp.bfloat16), w_io, bias, force_pallas=True))
    ref3 = x3 @ w_io + bias
    assert logits3.shape == (B3, OUT_FEATURES)
    assert logits3.dtype == jnp.float32
    assert jnp.allclose(logits3, ref3, atol=5e-2, rtol=5e-2)

    # 4) Tiny-batch XLA fallback path (no pallas_call).
    x4 = x[:5]
    logits4 = jax.block_until_ready(linear_forward(x4, w_io, bias))
    assert jnp.allclose(logits4, x4 @ w_io + bias, atol=1e-5, rtol=1e-5)

    print("KERNEL_OK")
</pallas_src>

<mosaic_0001>
module attributes {stable_mosaic.version = 11 : i64} {
  func.func @linear_kernel(%arg0: i32, %arg1: memref<8x300xf32, #tpu.memory_space<vmem>>, %arg2: memref<300x4xf32, #tpu.memory_space<vmem>>, %arg3: memref<1x4xf32, #tpu.memory_space<vmem>>, %arg4: memref<8x4xf32, #tpu.memory_space<vmem>>) attributes {dimension_semantics = [#tpu.dimension_semantics<parallel>], iteration_bounds = array<i64: 2>, scalar_prefetch = 0 : i64, scratch_operands = 0 : i64, tpu.core_type = #tpu.core_type<tc>, window_params = [{transform_indices = @transform_0, window_bounds = array<i64: 8, 300>}, {pipeline_mode = #tpu.pipeline_mode<synchronous>, transform_indices = @transform_1, window_bounds = array<i64: 300, 4>}, {pipeline_mode = #tpu.pipeline_mode<synchronous>, transform_indices = @transform_2, window_bounds = array<i64: 1, 4>}, {transform_indices = @transform_3, window_bounds = array<i64: 8, 4>}]} {
    %c0 = arith.constant 0 : index
    %c0_0 = arith.constant 0 : index
    %0 = vector.load %arg1[%c0, %c0_0] : memref<8x300xf32, #tpu.memory_space<vmem>>, vector<8x300xf32>
    %c0_1 = arith.constant 0 : index
    %c0_2 = arith.constant 0 : index
    %1 = vector.load %arg2[%c0_1, %c0_2] : memref<300x4xf32, #tpu.memory_space<vmem>>, vector<300x4xf32>
    %cst = arith.constant dense<0.000000e+00> : vector<8x4xf32>
    %2 = tpu.matmul %0, %1, %cst {dimension_numbers = #tpu.dot_dimension_numbers<[1], [0], [0], [1], [0, 0, 1, 1], [], []>} : vector<8x300xf32>, vector<300x4xf32>, vector<8x4xf32> -> vector<8x4xf32>
    %c0_3 = arith.constant 0 : index
    %c0_4 = arith.constant 0 : index
    %3 = vector.load %arg3[%c0_3, %c0_4] : memref<1x4xf32, #tpu.memory_space<vmem>>, vector<1x4xf32>
    %4 = vector.broadcast %3 : vector<1x4xf32> to vector<8x4xf32>
    %5 = arith.addf %2, %4 : vector<8x4xf32>
    %c0_5 = arith.constant 0 : index
    %c0_6 = arith.constant 0 : index
    %6 = vector.load %arg4[%c0_5, %c0_6] : memref<8x4xf32, #tpu.memory_space<vmem>>, vector<8x4xf32>
    tpu.vector_store %arg4[%c0_5, %c0_6], %5 {strides = array<i32>} : memref<8x4xf32, #tpu.memory_space<vmem>>, vector<8x4xf32>,
    return
  }
  func.func @transform_0(%arg0: i32) -> (i32, i32) {
    %c0_i32 = arith.constant 0 : i32
    %c0_i32_0 = arith.constant 0 : i32
    return %arg0, %c0_i32 : i32, i32
  }
  func.func @transform_1(%arg0: i32) -> (i32, i32) {
    %c0_i32 = arith.constant 0 : i32
    %c0_i32_0 = arith.constant 0 : i32
    %c0_i32_1 = arith.constant 0 : i32
    return %c0_i32, %c0_i32_0 : i32, i32
  }
  func.func @transform_2(%arg0: i32) -> (i32, i32) {
    %c0_i32 = arith.constant 0 : i32
    %c0_i32_0 = arith.constant 0 : i32
    %c0_i32_1 = arith.constant 0 : i32
    return %c0_i32, %c0_i32_0 : i32, i32
  }
  func.func @transform_3(%arg0: i32) -> (i32, i32) {
    %c0_i32 = arith.constant 0 : i32
    %c0_i32_0 = arith.constant 0 : i32
    return %arg0, %c0_i32 : i32, i32
  }
}

</mosaic_0001>

<bundles_post_ra>
// kernel: tpu_custom_call.1
= control target key start
LH: loop header
LB: loop body
LE: loop exit
PB: predicated region body
PF: predicated region fallthrough
CT: control target
= control target key end

     0   :  { %s530_s12 = smov 0   ;;  %s673_s0 = inlined_call_operand.vmem [shape: f32[16,300], index: 0, kind: input, shape index: {}]   ;;  %s674_s1 = inlined_call_operand.vmem [shape: f32[300,4], index: 1, kind: input, shape index: {}]   ;;  %s675_s2 = inlined_call_operand.vmem [shape: f32[1,4], index: 2, kind: input, shape index: {}]   ;;  %s676_s3 = inlined_call_operand.vmem [shape: f32[16,4], index: 3, kind: output, shape index: {}]  }
   0x1 LB: > { %s420_s13 = sadd.s32 4294967295, %s506_s12   ;;  %p424_p0 = scmp.ge.s32.totalorder %s506_s12, 1  ;;  %s506_s12 = sphi %s530_s12, %s13_s12  }
   0x2   : > { %p137_p1 = scmp.lt.s32.totalorder %s506_s12, 3 }
   0x4   : > { %p138_p2 = pnand %p424_p0, %p137_p1 }
   0x5   : > { %p160_p3 = scmp.lt.s32.totalorder (!%p138_p2), %s420_s13, 1 }
   0x6   : > { %141 = sbr.rel (%p138_p2) target bundleno = 246 (0xf6), region = 32 }
   0xb   : > { %v203_v0 = vld [vmem:[%s674_s1 + $0xf8] sm:$0xff]  ;;  %v202_v2 = vld [vmem:[%s674_s1 + $0xf0] sm:$0xff]  ;;  %v508_v4 = vmov 0.0   ;;  %v201_v5 = vld [vmem:[%s674_s1 + $0xe8] sm:$0xff]  ;;  %s678_s13 = smov (!%p160_p3, %s420_s13), 1  ;;  %vm509_vm0 = vmmov 0  }
   0xc   : > { %v187_v1 = vld [vmem:[%s674_s1 + $0x78] sm:$0xff]  ;;  %432 = vmatprep.subr.mxu0 %v203_v0  ;;  %v186_v3 = vld [vmem:[%s674_s1 + $0x70] sm:$0xff]  ;;  %474 = vmatprep.subr.mxu1 %v508_v4  ;;  %v185_v6 = vld [vmem:[%s674_s1 + $0x68] sm:$0xff]  ;;  %s489_s30 = smul.u32 24, %s678_s13  ;;  %vm221_vm1 = vcmask 1043456   ;;  %vm217_vm2 = vcmask 359424  }
   0xd   : > { %433 = vmatpush3.msra.mxu0 %v187_v1  ;;  %486 = vmatprep.mubr.msk.f32.mxu1 %vm509_vm0, %v508_v4  ;;  %v200_v7 = vld [vmem:[%s674_s1 + $0xe0] sm:$0xff]  ;;  %v199_v9 = vld [vmem:[%s674_s1 + $0xd8] sm:$0xff]  ;;  %v198_v11 = vld [vmem:[%s674_s1 + $0xd0] sm:$0xff]  ;;  %s426_s23 = sshll.u32 %s678_s13, 3  ;;  %vm365_vm3 = vcmask 31744  }
   0xe   : > { %434 = vmatprep.subr.mxu0 %v202_v2  ;;  %v184_v8 = vld [vmem:[%s674_s1 + $0x60] sm:$0xff]  ;;  %v183_v10 = vld [vmem:[%s674_s1 + $0x58] sm:$0xff]  ;;  %v209_v12 = vld [vmem:[%s674_s1 + $0x128] sm:$0xf]  ;;  %s586_s20 = scalar_lea.vmem %s673_s0, %s489_s30  ;;  %s168_s26 = scalar_lea.vmem %s676_s3, %s426_s23 }
   0xf   : > { %435 = vmatpush3.msra.mxu0 %v186_v3  ;;  %v182_v13 = vld [vmem:[%s674_s1 + $0x50] sm:$0xff]  ;;  %475 = vmatpush3.msk.msra.mxu1 %vm221_vm1, %v209_v12  ;;  %v208_v14 = vld [vmem:[%s674_s1 + $0x120] sm:$0xff]  ;;  %v197_v15 = vld [vmem:[%s674_s1 + $0xc8] sm:$0xff] }
  0x10   : > { %436 = vmatprep.subr.mxu0 %v201_v5  ;;  %476 = vmatprep.subr.mxu1 %v508_v4  ;;  %v207_v16 = vld [vmem:[%s674_s1 + $0x118] sm:$0xff]  ;;  %v181_v17 = vld [vmem:[%s674_s1 + $0x48] sm:$0xff]  ;;  %v196_v18 = vld [vmem:[%s674_s1 + $0xc0] sm:$0xff] }
  0x11   : > { %437 = vmatpush3.msra.mxu0 %v185_v6  ;;  %477 = vmatpush3.msra.mxu1 %v208_v14  ;;  %v170_v19 = vld [vmem:[%s586_s20 + $0x8] sm:$0xff]  ;;  %v180_v20 = vld [vmem:[%s674_s1 + $0x40] sm:$0xff]  ;;  %v206_v21 = vld [vmem:[%s674_s1 + $0x110] sm:$0xff] }
  0x12   : > { %438 = vmatprep.subr.mxu0 %v200_v7  ;;  %478 = vmatprep.subr.mxu1 %v508_v4  ;;  %v195_v22 = vld [vmem:[%s674_s1 + $0xb8] sm:$0xff]  ;;  %v205_v24 = vld [vmem:[%s674_s1 + $0x108] sm:$0xff]  ;;  %v194_v25 = vld [vmem:[%s674_s1 + $0xb0] sm:$0xff] }
  0x13   : > { %439 = vmatpush3.msra.mxu0 %v184_v8  ;;  %479 = vmatpush3.msra.mxu1 %v207_v16  ;;  %v179_v23 = vld [vmem:[%s674_s1 + $0x38] sm:$0xff]  ;;  %v178_v26 = vld [vmem:[%s674_s1 + $0x30] sm:$0xff]  ;;  %v204_v27 = vld [vmem:[%s674_s1 + $0x100] sm:$0xff] }
  0x14   : > { %440 = vmatprep.subr.mxu0 %v199_v9  ;;  %480 = vmatprep.subr.mxu1 %v508_v4  ;;  %v193_v28 = vld [vmem:[%s674_s1 + $0xa8] sm:$0xff]  ;;  %v171_v29 = vld [vmem:[%s586_s20 + $0x10] sm:$0xff]  ;;  %v192_v31 = vld [vmem:[%s674_s1 + $0xa0] sm:$0xff] }
  0x15   : > { %441 = vmatpush3.msra.mxu0 %v183_v10  ;;  %289 = vmatprep.mubr.f32.mxu0 %v170_v19  ;;  %v177_v30 = vld [vmem:[%s674_s1 + $0x28] sm:$0xff]  ;;  %v176_v32 = vld [vmem:[%s674_s1 + $0x20] sm:$0xff]  ;;  %v191_v33 = vld [vmem:[%s674_s1 + $0x98] sm:$0xff] }
  0x16   : > { %442 = vmatprep.subr.mxu0 %v198_v11  ;;  %481 = vmatpush3.msra.mxu1 %v206_v21  ;;  %v175_v34 = vld [vmem:[%s674_s1 + $0x18] sm:$0xff]  ;;  %v190_v35 = vld [vmem:[%s674_s1 + $0x90] sm:$0xff]  ;;  %v189_v37 = vld [vmem:[%s674_s1 + $0x88] sm:$0xff] }
  0x17   : > { %443 = vmatpush3.msra.mxu0 %v182_v13  ;;  %482 = vmatprep.subr.mxu1 %v508_v4  ;;  %v174_v36 = vld [vmem:[%s674_s1 + $0x10] sm:$0xff]  ;;  %v173_v38 = vld [vmem:[%s674_s1 + $0x8] sm:$0xff]  ;;  %v188_v39 = vld [vmem:[%s674_s1 + $0x80] sm:$0xff] }
  0x18   : > { %444 = vmatprep.subr.mxu0 %v197_v15  ;;  %483 = vmatpush3.msra.mxu1 %v205_v24  ;;  %v172_v40 = vld [vmem:[%s674_s1] sm:$0xff] }
  0x19   : > { %445 = vmatpush3.msra.mxu0 %v181_v17  ;;  %484 = vmatprep.subr.mxu1 %v508_v4  ;;  %v169_v41 = vld [vmem:[%s586_s20] sm:$0xff] }
  0x1a   : > { %446 = vmatprep.subr.mxu0 %v196_v18  ;;  %485 = vmatpush3.msra.mxu1 %v204_v27  ;;  %v427_v46 = vld [vmem:[%s675_s2] ss:$0 sm:$0xff] }
  0x1b   : > { %447 = vmatpush3.msra.mxu0 %v180_v20  ;;  %487 = vmatmul.mubr.msk.f32.vlgmr.msra.gmra.mxu1 %vm217_vm2, %v171_v29 }
  0x1c   : > { %448 = vmatprep.subr.mxu0 %v195_v22 }
  0x1d   : > { %449 = vmatpush3.msra.mxu0 %v179_v23 }
  0x1e   : > { %450 = vmatprep.subr.mxu0 %v194_v25 }
  0x1f   : > { %451 = vmatpush3.msra.mxu0 %v178_v26 }
  0x20   : > { %452 = vmatprep.subr.mxu0 %v193_v28 }
  0x21   : > { %453 = vmatpush3.msra.mxu0 %v177_v30 }
  0x22   : > { %454 = vmatprep.subr.mxu0 %v192_v31 }
  0x23   : > { %455 = vmatpush3.msra.mxu0 %v176_v32 }
  0x24   : > { %456 = vmatprep.subr.mxu0 %v191_v33 }
  0x25   : > { %457 = vmatpush3.msra.mxu0 %v175_v34 }
  0x26   : > { %458 = vmatprep.subr.mxu0 %v190_v35 }
  0x27   : > { %459 = vmatpush3.msra.mxu0 %v174_v36 }
  0x28   : > { %460 = vmatprep.subr.mxu0 %v189_v37 }
  0x29   : > { %461 = vmatpush3.msra.mxu0 %v173_v38 }
  0x2a   : > { %462 = vmatprep.subr.mxu0 %v188_v39 }
  0x2b   : > { %463 = vmatpush3.msra.mxu0 %v172_v40 }
  0x2c   : > { %290 = vmatmul.mubr.f32.vlgmr.msra.gmra.mxu0 %v169_v41 }
  0xdb   : > { %v361_v42 = vpop.f32.mrf.mxu1 }
  0xdd   : > { %v488_v43 = vpop.f32.mrf.mxu1 }
  0xec   : > { %v464_v44 = vpop.f32.mrf.mxu0 }
  0xee   : > { %v465_v45 = vpop.f32.mrf.mxu0 }
  0xef   : > { %v466_v47 = vadd.f32 %v465_v45, %v464_v44 }
  0xf1   : > { %v292_v48 = vadd.f32 %v466_v47, %v427_v46 }
  0xf3   : > { %v362_v49 = vadd.f32 %v361_v42, %v292_v48 }
  0xf5   : > { %366 = vst.msk [vmem:[%s168_s26] sm:$0xff] %vm365_vm3, %v362_v49 }
  0xf6 PF: > { %s13_s12 = sadd.s32 1, %s506_s12  }
  0xf7   : > { %p10_p4 = scmp.ge.s32.totalorder %s13_s12, 4  }
  0xf9   :  { %12 = sbr.rel (!%p10_p4) target bundleno = 1 (0x1), region = 62 }

</bundles_post_ra>
